<compile_context>
chip_gen: v7x
topology: tpu7x:2x2x1
jax: 0.10.0
libtpu: 0.0.40
codegen_flags: <defaults>
</compile_context>

<pallas_src>
import jax
import jax.numpy as jnp
import numpy as np
from jax.experimental import pallas as pl
from jax.experimental.pallas import tpu as pltpu


# ---------------------------------------------------------------------------
# Fused kernel: 1x1 convs (BN folded) + pooling + MLP + fuse, one batch / step
# ---------------------------------------------------------------------------
def _aff_fused_kernel(x_ref, g_ref, wx_ref, bx_ref, wg_ref, bg_ref,
                      w1a_ref, w1b_ref, b1_ref, w23_ref, b23_ref, out_ref):
    # x_ref: (ch1, HW), g_ref: (ch2, HW)       -- HW on the lane axis
    # wx/wg: (cint, ch_in) folded conv weights, bx/bg: (cint, 1)
    # w1a/w1b: (d, cint), b1: (d, 1), w23: (2*cint, d), b23: (2*cint, 1)
    cint = out_ref.shape[0]

    # --- 1x1 convs with BN folded; U1/U2 live only in VMEM/vregs -----------
    u1 = jnp.dot(wg_ref[...], g_ref[...],
                 preferred_element_type=jnp.float32) + bg_ref[...]   # (cint, HW)
    u2 = jnp.dot(wx_ref[...], x_ref[...],
                 preferred_element_type=jnp.float32) + bx_ref[...]   # (cint, HW)

    # --- global avg(U1) / max(U2) pooling over H*W (XLU lane reductions) ---
    avg = jnp.mean(u1, axis=1, keepdims=True)     # (cint, 1)
    mxp = jnp.max(u2, axis=1, keepdims=True)      # (cint, 1)

    # --- channel-attention MLP (column orientation, everything tiny) -------
    sa = 1.0 / (1.0 + jnp.exp(-avg))              # sigmoid(avg_pool)  (EUP)
    sm = 1.0 / (1.0 + jnp.exp(-mxp))              # sigmoid(max_pool)
    h = (jnp.dot(w1a_ref[...], sa, preferred_element_type=jnp.float32)
         + jnp.dot(w1b_ref[...], sm, preferred_element_type=jnp.float32)
         + b1_ref[...])                           # (d, 1)
    h = jnp.maximum(h, 0.0)
    z = (jnp.dot(w23_ref[...], h, preferred_element_type=jnp.float32)
         + b23_ref[...])                          # (2*cint, 1)
    z1 = z[:cint, :]
    z2 = z[cint:, :]
    # 2-way softmax, numerically stable: a1 = sigmoid(z1 - z2), a2 = 1 - a1.
    a1 = 1.0 / (1.0 + jnp.exp(z2 - z1))           # (cint, 1)

    # --- fuse = U1*a1 + U2*a2 + (U1 + U2) = U1*(a1+1) + U2*(2-a1) ----------
    out_ref[...] = u1 * (a1 + 1.0) + u2 * (2.0 - a1)


# ---------------------------------------------------------------------------
# Wrapper
# ---------------------------------------------------------------------------
def _vmem_limit_bytes(ch1, ch2, cint, HW):
    # Double-buffered in/out blocks + U1/U2 intermediates + small weights.
    blocks = 4 * HW * (ch1 + ch2 + cint) * 2       # x, g, out (x2 buffers)
    inter = 4 * HW * cint * 2                      # u1, u2
    small = 256 << 10                              # weights/biases/headroom
    want = 2 * (blocks + inter) + small
    # Cap at 64 MiB so the request is always valid on v7x (smallest VMEM).
    return int(min(max(want, 32 << 20), 64 << 20))


def aff_block_forward(x_nchw, g_nchw, params):
    B, ch1, H, W = x_nchw.shape
    ch2 = g_nchw.shape[1]
    HW = H * W
    cint = params["wx_t"].shape[0]
    d = params["w1a_t"].shape[0]

    # NCHW-native: (B, C, H*W) is a free reshape; HW lands on the lane axis.
    x = x_nchw.reshape(B, ch1, HW).astype(jnp.float32)
    g = g_nchw.reshape(B, ch2, HW).astype(jnp.float32)

    # TODO(synk): for very large H*W (so that full-HW-per-batch blocks exceed
    # VMEM, e.g. on v7x's 64 MiB) the HW axis should be tiled with a two-pass
    # pooling/fuse structure; full-HW blocks are used here.
    out = pl.pallas_call(
        _aff_fused_kernel,
        grid=(B,),
        in_specs=[
            pl.BlockSpec((None, ch1, HW), lambda b: (b, 0, 0)),   # x
            pl.BlockSpec((None, ch2, HW), lambda b: (b, 0, 0)),   # g
            pl.BlockSpec((cint, ch1), lambda b: (0, 0)),          # wx_t
            pl.BlockSpec((cint, 1), lambda b: (0, 0)),            # bx_t
            pl.BlockSpec((cint, ch2), lambda b: (0, 0)),          # wg_t
            pl.BlockSpec((cint, 1), lambda b: (0, 0)),            # bg_t
            pl.BlockSpec((d, cint), lambda b: (0, 0)),            # w1a_t
            pl.BlockSpec((d, cint), lambda b: (0, 0)),            # w1b_t
            pl.BlockSpec((d, 1), lambda b: (0, 0)),               # b1_t
            pl.BlockSpec((2 * cint, d), lambda b: (0, 0)),        # w23_t
            pl.BlockSpec((2 * cint, 1), lambda b: (0, 0)),        # b23_t
        ],
        out_specs=pl.BlockSpec((None, cint, HW), lambda b: (b, 0, 0)),
        out_shape=jax.ShapeDtypeStruct((B, cint, HW), jnp.float32),
        compiler_params=pltpu.CompilerParams(
            dimension_semantics=("parallel",),
            vmem_limit_bytes=_vmem_limit_bytes(ch1, ch2, cint, HW)),
    )(x, g,
      params["wx_t"], params["bx_t"], params["wg_t"], params["bg_t"],
      params["w1a_t"], params["w1b_t"], params["b1_t"],
      params["w23_t"], params["b23_t"])

    # Output is already NCHW-ordered: just reshape (free).
    return out.reshape(B, cint, H, W)


# ---------------------------------------------------------------------------
# Deterministic parameter init (matches AFF_block.__init__ shapes), BN folded,
# stored in the NCHW-native / transposed forms the kernel consumes.
# ---------------------------------------------------------------------------
def init_params(key, ch1, ch2, cint):
    eps = 1e-5
    r, L = 8, 48
    d = max(int(cint / r), L)
    ks = jax.random.split(key, 20)

    # W_g: Conv2d(ch2, cint, 1) + BatchNorm2d(cint)   (inference-mode BN)
    wg_conv = jax.random.normal(ks[0], (cint, ch2), jnp.float32) * 0.1
    bg_conv = jax.random.normal(ks[1], (cint,), jnp.float32) * 0.1
    gam_g = 1.0 + 0.1 * jax.random.normal(ks[2], (cint,), jnp.float32)
    bet_g = 0.1 * jax.random.normal(ks[3], (cint,), jnp.float32)
    mu_g = 0.1 * jax.random.normal(ks[4], (cint,), jnp.float32)
    var_g = 1.0 + 0.1 * jnp.abs(jax.random.normal(ks[5], (cint,), jnp.float32))

    # W_x: Conv2d(ch1, cint, 1) + BatchNorm2d(cint)
    wx_conv = jax.random.normal(ks[6], (cint, ch1), jnp.float32) * 0.1
    bx_conv = jax.random.normal(ks[7], (cint,), jnp.float32) * 0.1
    gam_x = 1.0 + 0.1 * jax.random.normal(ks[8], (cint,), jnp.float32)
    bet_x = 0.1 * jax.random.normal(ks[9], (cint,), jnp.float32)
    mu_x = 0.1 * jax.random.normal(ks[10], (cint,), jnp.float32)
    var_x = 1.0 + 0.1 * jnp.abs(jax.random.normal(ks[11], (cint,), jnp.float32))

    sg = gam_g / jnp.sqrt(var_g + eps)
    sx = gam_x / jnp.sqrt(var_x + eps)
    # Folded, stored in (cint, ch_in) "row = out channel" form.
    wg_t = wg_conv * sg[:, None]                        # (cint, ch2)
    bg_t = ((bg_conv - mu_g) * sg + bet_g)[:, None]     # (cint, 1)
    wx_t = wx_conv * sx[:, None]                        # (cint, ch1)
    bx_t = ((bx_conv - mu_x) * sx + bet_x)[:, None]     # (cint, 1)

    # W1: Linear(2*cint, d) split into avg/max halves, stored (d, cint) so the
    # kernel runs the MLP on (cint, 1) column vectors.  W2/W3 concatenated.
    w1 = jax.random.normal(ks[12], (2 * cint, d), jnp.float32) * 0.1
    b1_t = (0.1 * jax.random.normal(ks[13], (d,), jnp.float32))[:, None]
    w2 = jax.random.normal(ks[14], (d, cint), jnp.float32) * 0.1
    b2 = 0.1 * jax.random.normal(ks[15], (cint,), jnp.float32)
    w3 = jax.random.normal(ks[16], (d, cint), jnp.float32) * 0.1
    b3 = 0.1 * jax.random.normal(ks[17], (cint,), jnp.float32)

    return dict(
        wg_t=wg_t, bg_t=bg_t, wx_t=wx_t, bx_t=bx_t,
        w1a_t=w1[:cint].T, w1b_t=w1[cint:].T, b1_t=b1_t,      # (d, cint), (d, 1)
        w23_t=jnp.concatenate([w2.T, w3.T], axis=0),          # (2*cint, d)
        b23_t=jnp.concatenate([b2, b3], axis=0)[:, None],     # (2*cint, 1)
    )


# ---------------------------------------------------------------------------
# Pure-JAX reference (mirrors the PyTorch forward with the same folded params).
# ---------------------------------------------------------------------------
def reference(x_nchw, g_nchw, p):
    x = jnp.transpose(x_nchw, (0, 2, 3, 1)).astype(jnp.float32)
    g = jnp.transpose(g_nchw, (0, 2, 3, 1)).astype(jnp.float32)
    u1 = jnp.einsum("bhwc,dc->bhwd", g, p["wg_t"]) + p["bg_t"][:, 0]
    u2 = jnp.einsum("bhwc,dc->bhwd", x, p["wx_t"]) + p["bx_t"][:, 0]
    u = u1 + u2
    avg = jnp.mean(u1, axis=(1, 2))
    mx = jnp.max(u2, axis=(1, 2))
    sc = jax.nn.sigmoid(jnp.concatenate([avg, mx], axis=1))      # (B, 2*cint)
    w1 = jnp.concatenate([p["w1a_t"].T, p["w1b_t"].T], axis=0)   # (2*cint, d)
    h = jax.nn.relu(sc @ w1 + p["b1_t"][:, 0])
    z = h @ p["w23_t"].T + p["b23_t"][:, 0]                      # (B, 2*cint)
    cint = p["wx_t"].shape[0]
    z1, z2 = z[:, :cint], z[:, cint:]
    a1 = jnp.exp(z1) / (jnp.exp(z1) + jnp.exp(z2))
    a2 = jnp.exp(z2) / (jnp.exp(z1) + jnp.exp(z2))
    fuse = u1 * a1[:, None, None, :] + u2 * a2[:, None, None, :] + u
    return jnp.transpose(fuse, (0, 3, 1, 2))


if __name__ == "__main__":
    # TODO(synk): BatchNorm is implemented in inference mode (running stats);
    # PyTorch training-mode batch statistics are not reproduced. Dropout2d is
    # unused in the PyTorch forward and therefore omitted.
    B, ch1, ch2, ch_int, H, W = 2, 4, 6, 8, 16, 16   # HW = 256 (lane-dense)

    key = jax.random.PRNGKey(0)
    kx, kg, kp = jax.random.split(key, 3)
    x = jax.random.normal(kx, (B, ch1, H, W), jnp.float32)   # "x" input (NCHW)
    g = jax.random.normal(kg, (B, ch2, H, W), jnp.float32)   # "g" input (NCHW)
    params = init_params(kp, ch1, ch2, ch_int)

    out = jax.block_until_ready(aff_block_forward(x, g, params))
    ref = jax.block_until_ready(reference(x, g, params))
    np.testing.assert_allclose(np.asarray(out), np.asarray(ref),
                               rtol=1e-4, atol=1e-5)
    assert out.shape == (B, ch_int, H, W)
    print("KERNEL_OK")
</pallas_src>

<mosaic_0001>
module attributes {stable_mosaic.version = 11 : i64} {
  func.func @_aff_fused_kernel(%arg0: i32, %arg1: memref<1x4x256xf32, #tpu.memory_space<vmem>>, %arg2: memref<1x6x256xf32, #tpu.memory_space<vmem>>, %arg3: memref<8x4xf32, #tpu.memory_space<vmem>>, %arg4: memref<8x1xf32, #tpu.memory_space<vmem>>, %arg5: memref<8x6xf32, #tpu.memory_space<vmem>>, %arg6: memref<8x1xf32, #tpu.memory_space<vmem>>, %arg7: memref<48x8xf32, #tpu.memory_space<vmem>>, %arg8: memref<48x8xf32, #tpu.memory_space<vmem>>, %arg9: memref<48x1xf32, #tpu.memory_space<vmem>>, %arg10: memref<16x48xf32, #tpu.memory_space<vmem>>, %arg11: memref<16x1xf32, #tpu.memory_space<vmem>>, %arg12: memref<1x8x256xf32, #tpu.memory_space<vmem>>) attributes {dimension_semantics = [#tpu.dimension_semantics<parallel>], iteration_bounds = array<i64: 2>, scalar_prefetch = 0 : i64, scratch_operands = 0 : i64, tpu.core_type = #tpu.core_type<tc>, window_params = [{transform_indices = @transform_0, window_bounds = array<i64: 1, 4, 256>}, {transform_indices = @transform_1, window_bounds = array<i64: 1, 6, 256>}, {pipeline_mode = #tpu.pipeline_mode<synchronous>, transform_indices = @transform_2, window_bounds = array<i64: 8, 4>}, {pipeline_mode = #tpu.pipeline_mode<synchronous>, transform_indices = @transform_3, window_bounds = array<i64: 8, 1>}, {pipeline_mode = #tpu.pipeline_mode<synchronous>, transform_indices = @transform_4, window_bounds = array<i64: 8, 6>}, {pipeline_mode = #tpu.pipeline_mode<synchronous>, transform_indices = @transform_5, window_bounds = array<i64: 8, 1>}, {pipeline_mode = #tpu.pipeline_mode<synchronous>, transform_indices = @transform_6, window_bounds = array<i64: 48, 8>}, {pipeline_mode = #tpu.pipeline_mode<synchronous>, transform_indices = @transform_7, window_bounds = array<i64: 48, 8>}, {pipeline_mode = #tpu.pipeline_mode<synchronous>, transform_indices = @transform_8, window_bounds = array<i64: 48, 1>}, {pipeline_mode = #tpu.pipeline_mode<synchronous>, transform_indices = @transform_9, window_bounds = array<i64: 16, 48>}, {pipeline_mode = #tpu.pipeline_mode<synchronous>, transform_indices = @transform_10, window_bounds = array<i64: 16, 1>}, {transform_indices = @transform_11, window_bounds = array<i64: 1, 8, 256>}]} {
    %c0 = arith.constant 0 : index
    %c0_0 = arith.constant 0 : index
    %0 = vector.load %arg5[%c0, %c0_0] : memref<8x6xf32, #tpu.memory_space<vmem>>, vector<8x6xf32>
    %c0_1 = arith.constant 0 : index
    %c0_2 = arith.constant 0 : index
    %c0_3 = arith.constant 0 : index
    %1 = vector.load %arg2[%c0_1, %c0_2, %c0_3] : memref<1x6x256xf32, #tpu.memory_space<vmem>>, vector<1x6x256xf32>
    %2 = vector.shape_cast %1 : vector<1x6x256xf32> to vector<6x256xf32>
    %cst = arith.constant dense<0.000000e+00> : vector<8x256xf32>
    %3 = tpu.matmul %0, %2, %cst {dimension_numbers = #tpu.dot_dimension_numbers<[1], [0], [0], [1], [0, 0, 1, 1], [], []>} : vector<8x6xf32>, vector<6x256xf32>, vector<8x256xf32> -> vector<8x256xf32>
    %c0_4 = arith.constant 0 : index
    %c0_5 = arith.constant 0 : index
    %4 = vector.load %arg6[%c0_4, %c0_5] : memref<8x1xf32, #tpu.memory_space<vmem>>, vector<8x1xf32>
    %5 = vector.broadcast %4 : vector<8x1xf32> to vector<8x256xf32>
    %6 = arith.addf %3, %5 : vector<8x256xf32>
    %c0_6 = arith.constant 0 : index
    %c0_7 = arith.constant 0 : index
    %7 = vector.load %arg3[%c0_6, %c0_7] : memref<8x4xf32, #tpu.memory_space<vmem>>, vector<8x4xf32>
    %c0_8 = arith.constant 0 : index
    %c0_9 = arith.constant 0 : index
    %c0_10 = arith.constant 0 : index
    %8 = vector.load %arg1[%c0_8, %c0_9, %c0_10] : memref<1x4x256xf32, #tpu.memory_space<vmem>>, vector<1x4x256xf32>
    %9 = vector.shape_cast %8 : vector<1x4x256xf32> to vector<4x256xf32>
    %cst_11 = arith.constant dense<0.000000e+00> : vector<8x256xf32>
    %10 = tpu.matmul %7, %9, %cst_11 {dimension_numbers = #tpu.dot_dimension_numbers<[1], [0], [0], [1], [0, 0, 1, 1], [], []>} : vector<8x4xf32>, vector<4x256xf32>, vector<8x256xf32> -> vector<8x256xf32>
    %c0_12 = arith.constant 0 : index
    %c0_13 = arith.constant 0 : index
    %11 = vector.load %arg4[%c0_12, %c0_13] : memref<8x1xf32, #tpu.memory_space<vmem>>, vector<8x1xf32>
    %12 = vector.broadcast %11 : vector<8x1xf32> to vector<8x256xf32>
    %13 = arith.addf %10, %12 : vector<8x256xf32>
    %cst_14 = arith.constant dense<0.000000e+00> : vector<8xf32>
    %14 = vector.multi_reduction <add>, %6, %cst_14 [1] : vector<8x256xf32> to vector<8xf32>
    %15 = vector.shape_cast %14 : vector<8xf32> to vector<8x1xf32>
    %cst_15 = arith.constant 2.560000e+02 : f32
    %16 = vector.broadcast %cst_15 : f32 to vector<8x1xf32>
    %17 = arith.divf %15, %16 : vector<8x1xf32>
    %cst_16 = arith.constant dense<0xFF800000> : vector<8xf32>
    %18 = vector.multi_reduction <maximumf>, %13, %cst_16 [1] : vector<8x256xf32> to vector<8xf32>
    %19 = vector.shape_cast %18 : vector<8xf32> to vector<8x1xf32>
    %cst_17 = arith.constant 0.000000e+00 : f32
    %20 = vector.broadcast %cst_17 : f32 to vector<8x1xf32>
    %21 = arith.subf %20, %17 : vector<8x1xf32>
    %22 = math.exp %21 : vector<8x1xf32>
    %cst_18 = arith.constant 1.000000e+00 : f32
    %23 = vector.broadcast %cst_18 : f32 to vector<8x1xf32>
    %24 = arith.addf %23, %22 : vector<8x1xf32>
    %cst_19 = arith.constant 1.000000e+00 : f32
    %25 = vector.broadcast %cst_19 : f32 to vector<8x1xf32>
    %26 = arith.divf %25, %24 : vector<8x1xf32>
    %cst_20 = arith.constant 0.000000e+00 : f32
    %27 = vector.broadcast %cst_20 : f32 to vector<8x1xf32>
    %28 = arith.subf %27, %19 : vector<8x1xf32>
    %29 = math.exp %28 : vector<8x1xf32>
    %cst_21 = arith.constant 1.000000e+00 : f32
    %30 = vector.broadcast %cst_21 : f32 to vector<8x1xf32>
    %31 = arith.addf %30, %29 : vector<8x1xf32>
    %cst_22 = arith.constant 1.000000e+00 : f32
    %32 = vector.broadcast %cst_22 : f32 to vector<8x1xf32>
    %33 = arith.divf %32, %31 : vector<8x1xf32>
    %c0_23 = arith.constant 0 : index
    %c0_24 = arith.constant 0 : index
    %34 = vector.load %arg7[%c0_23, %c0_24] : memref<48x8xf32, #tpu.memory_space<vmem>>, vector<48x8xf32>
    %cst_25 = arith.constant dense<0.000000e+00> : vector<48x1xf32>
    %35 = tpu.matmul %34, %26, %cst_25 {dimension_numbers = #tpu.dot_dimension_numbers<[1], [0], [0], [1], [0, 0, 1, 1], [], []>} : vector<48x8xf32>, vector<8x1xf32>, vector<48x1xf32> -> vector<48x1xf32>
    %c0_26 = arith.constant 0 : index
    %c0_27 = arith.constant 0 : index
    %36 = vector.load %arg8[%c0_26, %c0_27] : memref<48x8xf32, #tpu.memory_space<vmem>>, vector<48x8xf32>
    %cst_28 = arith.constant dense<0.000000e+00> : vector<48x1xf32>
    %37 = tpu.matmul %36, %33, %cst_28 {dimension_numbers = #tpu.dot_dimension_numbers<[1], [0], [0], [1], [0, 0, 1, 1], [], []>} : vector<48x8xf32>, vector<8x1xf32>, vector<48x1xf32> -> vector<48x1xf32>
    %38 = arith.addf %35, %37 : vector<48x1xf32>
    %c0_29 = arith.constant 0 : index
    %c0_30 = arith.constant 0 : index
    %39 = vector.load %arg9[%c0_29, %c0_30] : memref<48x1xf32, #tpu.memory_space<vmem>>, vector<48x1xf32>
    %40 = arith.addf %38, %39 : vector<48x1xf32>
    %cst_31 = arith.constant 0.000000e+00 : f32
    %41 = vector.broadcast %cst_31 : f32 to vector<48x1xf32>
    %42 = arith.maximumf %40, %41 : vector<48x1xf32>
    %c0_32 = arith.constant 0 : index
    %c0_33 = arith.constant 0 : index
    %43 = vector.load %arg10[%c0_32, %c0_33] : memref<16x48xf32, #tpu.memory_space<vmem>>, vector<16x48xf32>
    %cst_34 = arith.constant dense<0.000000e+00> : vector<16x1xf32>
    %44 = tpu.matmul %43, %42, %cst_34 {dimension_numbers = #tpu.dot_dimension_numbers<[1], [0], [0], [1], [0, 0, 1, 1], [], []>} : vector<16x48xf32>, vector<48x1xf32>, vector<16x1xf32> -> vector<16x1xf32>
    %c0_35 = arith.constant 0 : index
    %c0_36 = arith.constant 0 : index
    %45 = vector.load %arg11[%c0_35, %c0_36] : memref<16x1xf32, #tpu.memory_space<vmem>>, vector<16x1xf32>
    %46 = arith.addf %44, %45 : vector<16x1xf32>
    %47 = vector.extract_strided_slice %46 {offsets = [0, 0], sizes = [8, 1], strides = [1, 1]} : vector<16x1xf32> to vector<8x1xf32>
    %48 = vector.extract_strided_slice %46 {offsets = [8, 0], sizes = [8, 1], strides = [1, 1]} : vector<16x1xf32> to vector<8x1xf32>
    %49 = arith.subf %48, %47 : vector<8x1xf32>
    %50 = math.exp %49 : vector<8x1xf32>
    %cst_37 = arith.constant 1.000000e+00 : f32
    %51 = vector.broadcast %cst_37 : f32 to vector<8x1xf32>
    %52 = arith.addf %51, %50 : vector<8x1xf32>
    %cst_38 = arith.constant 1.000000e+00 : f32
    %53 = vector.broadcast %cst_38 : f32 to vector<8x1xf32>
    %54 = arith.divf %53, %52 : vector<8x1xf32>
    %cst_39 = arith.constant 1.000000e+00 : f32
    %55 = vector.broadcast %cst_39 : f32 to vector<8x1xf32>
    %56 = arith.addf %54, %55 : vector<8x1xf32>
    %57 = vector.broadcast %56 : vector<8x1xf32> to vector<8x256xf32>
    %58 = arith.mulf %6, %57 : vector<8x256xf32>
    %cst_40 = arith.constant 2.000000e+00 : f32
    %59 = vector.broadcast %cst_40 : f32 to vector<8x1xf32>
    %60 = arith.subf %59, %54 : vector<8x1xf32>
    %61 = vector.broadcast %60 : vector<8x1xf32> to vector<8x256xf32>
    %62 = arith.mulf %13, %61 : vector<8x256xf32>
    %63 = arith.addf %58, %62 : vector<8x256xf32>
    %c0_41 = arith.constant 0 : index
    %c0_42 = arith.constant 0 : index
    %c0_43 = arith.constant 0 : index
    %64 = vector.load %arg12[%c0_41, %c0_42, %c0_43] : memref<1x8x256xf32, #tpu.memory_space<vmem>>, vector<1x8x256xf32>
    %65 = vector.shape_cast %64 : vector<1x8x256xf32> to vector<8x256xf32>
    %66 = vector.shape_cast %63 : vector<8x256xf32> to vector<1x8x256xf32>
    tpu.vector_store %arg12[%c0_41, %c0_42, %c0_43], %66 {strides = array<i32>} : memref<1x8x256xf32, #tpu.memory_space<vmem>>, vector<1x8x256xf32>,
    return
  }
  func.func @transform_0(%arg0: i32) -> (i32, i32, i32) {
    %c0_i32 = arith.constant 0 : i32
    %c0_i32_0 = arith.constant 0 : i32
    %c0_i32_1 = arith.constant 0 : i32
    return %arg0, %c0_i32, %c0_i32_0 : i32, i32, i32
  }
  func.func @transform_1(%arg0: i32) -> (i32, i32, i32) {
    %c0_i32 = arith.constant 0 : i32
    %c0_i32_0 = arith.constant 0 : i32
    %c0_i32_1 = arith.constant 0 : i32
    return %arg0, %c0_i32, %c0_i32_0 : i32, i32, i32
  }
  func.func @transform_2(%arg0: i32) -> (i32, i32) {
    %c0_i32 = arith.constant 0 : i32
    %c0_i32_0 = arith.constant 0 : i32
    %c0_i32_1 = arith.constant 0 : i32
    return %c0_i32, %c0_i32_0 : i32, i32
  }
  func.func @transform_3(%arg0: i32) -> (i32, i32) {
    %c0_i32 = arith.constant 0 : i32
    %c0_i32_0 = arith.constant 0 : i32
    %c0_i32_1 = arith.constant 0 : i32
    return %c0_i32, %c0_i32_0 : i32, i32
  }
  func.func @transform_4(%arg0: i32) -> (i32, i32) {
    %c0_i32 = arith.constant 0 : i32
    %c0_i32_0 = arith.constant 0 : i32
    %c0_i32_1 = arith.constant 0 : i32
    return %c0_i32, %c0_i32_0 : i32, i32
  }
  func.func @transform_5(%arg0: i32) -> (i32, i32) {
    %c0_i32 = arith.constant 0 : i32
    %c0_i32_0 = arith.constant 0 : i32
    %c0_i32_1 = arith.constant 0 : i32
    return %c0_i32, %c0_i32_0 : i32, i32
  }
  func.func @transform_6(%arg0: i32) -> (i32, i32) {
    %c0_i32 = arith.constant 0 : i32
    %c0_i32_0 = arith.constant 0 : i32
    %c0_i32_1 = arith.constant 0 : i32
    return %c0_i32, %c0_i32_0 : i32, i32
  }
  func.func @transform_7(%arg0: i32) -> (i32, i32) {
    %c0_i32 = arith.constant 0 : i32
    %c0_i32_0 = arith.constant 0 : i32
    %c0_i32_1 = arith.constant 0 : i32
    return %c0_i32, %c0_i32_0 : i32, i32
  }
  func.func @transform_8(%arg0: i32) -> (i32, i32) {
    %c0_i32 = arith.constant 0 : i32
    %c0_i32_0 = arith.constant 0 : i32
    %c0_i32_1 = arith.constant 0 : i32
    return %c0_i32, %c0_i32_0 : i32, i32
  }
  func.func @transform_9(%arg0: i32) -> (i32, i32) {
    %c0_i32 = arith.constant 0 : i32
    %c0_i32_0 = arith.constant 0 : i32
    %c0_i32_1 = arith.constant 0 : i32
    return %c0_i32, %c0_i32_0 : i32, i32
  }
  func.func @transform_10(%arg0: i32) -> (i32, i32) {
    %c0_i32 = arith.constant 0 : i32
    %c0_i32_0 = arith.constant 0 : i32
    %c0_i32_1 = arith.constant 0 : i32
    return %c0_i32, %c0_i32_0 : i32, i32
  }
  func.func @transform_11(%arg0: i32) -> (i32, i32, i32) {
    %c0_i32 = arith.constant 0 : i32
    %c0_i32_0 = arith.constant 0 : i32
    %c0_i32_1 = arith.constant 0 : i32
    return %arg0, %c0_i32, %c0_i32_0 : i32, i32, i32
  }
}

</mosaic_0001>

<bundles_post_ra>
// kernel: tpu_custom_call.1
= control target key start
LH: loop header
LB: loop body
LE: loop exit
PB: predicated region body
PF: predicated region fallthrough
CT: control target
= control target key end

     0   :  { %s1569_s0 = inlined_call_operand.vmem [shape: f32[2,4,256], index: 0, kind: input, shape index: {}]   ;;  %s1570_s1 = inlined_call_operand.vmem [shape: f32[2,6,256], index: 1, kind: input, shape index: {}]   ;;  %s1571_s2 = inlined_call_operand.vmem [shape: f32[8,4], index: 2, kind: input, shape index: {}]   ;;  %s1572_s3 = inlined_call_operand.vmem [shape: f32[8,1], index: 3, kind: input, shape index: {}]   ;;  %s1573_s4 = inlined_call_operand.vmem [shape: f32[8,6], index: 4, kind: input, shape index: {}]   ;;  %s1574_s5 = inlined_call_operand.vmem [shape: f32[8,1], index: 5, kind: input, shape index: {}]   ;;  %s1575_s6 = inlined_call_operand.vmem [shape: f32[48,8], index: 6, kind: input, shape index: {}]   ;;  %s1576_s7 = inlined_call_operand.vmem [shape: f32[48,8], index: 7, kind: input, shape index: {}]   ;;  %s1577_s8 = inlined_call_operand.vmem [shape: f32[48,1], index: 8, kind: input, shape index: {}]   ;;  %s1578_s9 = inlined_call_operand.vmem [shape: f32[16,48], index: 9, kind: input, shape index: {}]   ;;  %s1579_s10 = inlined_call_operand.vmem [shape: f32[16,1], index: 10, kind: input, shape index: {}]   ;;  %s1580_s11 = inlined_call_operand.hbm [shape: f32[2,8,256], index: 11, kind: output, shape index: {}]  }
   0x1   :  { %1582 = sst [smem:[#allocation7_spill]] %s1574_s5 }
   0x2   :  { %16 = vsyncpa [#allocation3], 0 }
   0x3   :  { %18 = vsyncpa [#allocation3 + $0x1], 0  ;;  %s1358_s17 = smov 0   ;;  %s1360_s18 = smov 0  }
   0x4   :  { %s1362_s19 = smov 0   ;;  %s1364_s20 = smov 0  }
   0x5 LB: > { %1583 = sst [smem:[#allocation5_spill]] %s1289_s19  ;;  %s1379_s21 = sadd.s32 4294967295, %s1293_s20   ;;  %s1293_s20 = sphi %s1364_s20, %s1593_s20   ;;  %s1289_s19 = sphi %s1362_s19, %s1592_s19   ;;  %s1285_s18 = sphi %s1360_s18, %s1591_s18   ;;  %s1281_s17 = sphi %s1358_s17, %s1590_s17  }
   0x6   : > { %s1061_s22 = sadd.s32 4294967294, %s1293_s20   ;;  %s1383_s23 = sadd.s32 1, %s1293_s20  }
   0x7   : > { %s272_s24 = sadd.s32 1, %s1289_s19  ;;  %s269_s25 = ssub.s32 %s1293_s20, %s1383_s23 }
   0x8   : > { %p282_p0 = scmp.ne.s32.totalorder %s1289_s19, %s1285_s18  ;;  %p270_p1 = scmp.eq.s32.totalorder %s269_s25, 0 }
   0x9   : > { %p283_p2 = scmp.eq.s32.totalorder %s1379_s21, 1  ;;  %p288_p3 = scmp.ne.s32.totalorder %s1285_s18, %s1281_s17 }
   0xa   : > { %p289_p4 = scmp.eq.s32.totalorder %s1061_s22, 1  ;;  %p1064_p7 = scmp.ge.s32.totalorder %s1293_s20, 1 }
   0xb   : > { %s1394_s26 = scalar_select %p270_p1, %s1289_s19, %s272_s24  }
   0xc   : > { %p1396_p5 = por %p283_p2, %p282_p0  ;;  %p1400_p6 = por %p289_p4, %p288_p3 }
   0xd   : > { %1584 = sst [smem:[#allocation6_spill]] %s1394_s26  ;;  %p350_p8 = scmp.lt.s32.totalorder %s1293_s20, 3 }
   0xf   : > { %p351_p9 = pnand %p1064_p7, %p350_p8 }
  0x10   : > { %p395_p10 = scmp.lt.s32.totalorder (!%p351_p9), %s1379_s21, 1  ;;  %v1295_v0 = vmov (!%p351_p9), 0.0   ;;  %s1587_s5 = sld [smem:[#allocation7_spill]] (!%p351_p9)  ;;  %v1296_v2 = vmov (!%p351_p9), 0   ;;  %vm418_vm0 = vcmask (!%p351_p9), 1045504   ;;  %v498_v3 = vld [vmem:[%s1572_s3] sm:$0xff] (!%p351_p9) }
  0x11   : > { %354 = sbr.rel (%p351_p9) target bundleno = 1048 (0x418), region = 64  ;;  %489 = vmatprep.mubr.f32.mxu0 (!%p351_p9), %v1295_v0  ;;  %579 = vmatprep.mubr.f32.mxu1 (!%p351_p9), %v1295_v0  ;;  %v405_v4 = vld [vmem:[%s1573_s4] sm:$0xff] (!%p351_p9)  ;;  %vm414_vm1 = vcmask (!%p351_p9), 48128   ;;  %vm510_vm2 = vcmask (!%p351_p9), 1043456   ;;  %vm506_vm3 = vcmask (!%p351_p9), 31744   ;;  %vm618_vm4 = vcmask (!%p351_p9), 64512  }
  0x12   : > { %1216 = vset.pattern.permute.xlu0 (!%p351_p9), %v1296_v2  ;;  %1217 = vset.pattern.permute.xlu1 (!%p351_p9), %v1296_v2  ;;  %v496_v9 = vld [vmem:[%s1571_s2] sm:$0xff] (!%p351_p9)  ;;  %v607_v36 = vld [vmem:[%s1575_s6 + $0x8] sm:$0xff] (!%p351_p9)  ;;  %v608_v37 = vld [vmem:[%s1575_s6 + $0x10] sm:$0xff] (!%p351_p9)  ;;  %vm867_vm5 = vcmask (!%p351_p9), 392192   ;;  %s392_s16 = sand.u32 (!%p351_p9), 1, %s1285_s18   ;;  %s1097_s24 = sshll.u32 (!%p351_p9), %s1379_s21, 8 }
  0x13   : > { %v606_v22 = vld [vmem:[%s1575_s6] sm:$0xff] (!%p351_p9)  ;;  %v613_v39 = vld [vmem:[%s1576_s7 + $0x8] sm:$0xff] (!%p351_p9)  ;;  %v614_v40 = vld [vmem:[%s1576_s7 + $0x10] sm:$0xff] (!%p351_p9)  ;;  %s1065_s22 = sshll.u32 (!%p351_p9), %s392_s16, 4  ;;  %s1527_s15 = scalar_lea.hbm (!%p351_p9), %s1580_s11, %s1097_s24 }
  0x14   : > { %v612_v23 = vld [vmem:[%s1576_s7] sm:$0xff] (!%p351_p9)  ;;  %v609_v41 = vld [vmem:[%s1575_s6 + $0x18] sm:$0xff] (!%p351_p9)  ;;  %v611_v45 = vld [vmem:[%s1575_s6 + $0x28] sm:$0xff] (!%p351_p9)  ;;  %s1297_s19 = smov (!%p351_p9), [#allocation2]  }
  0x15   : > { %v610_v42 = vld [vmem:[%s1575_s6 + $0x20] sm:$0xff] (!%p351_p9)  ;;  %v615_v43 = vld [vmem:[%s1576_s7 + $0x18] sm:$0xff] (!%p351_p9)  ;;  %v617_v46 = vld [vmem:[%s1576_s7 + $0x28] sm:$0xff] (!%p351_p9)  ;;  %s1235_s26 = sshll.u32 (!%p351_p9), %s1297_s19, 4  ;;  %s1236_s26 = int_to_ptr.vmem [resolvable:$false] %s1235_s26 }
  0x16   : > { %v408_v1 = vld [vmem:[%s1587_s5] sm:$0xff] (!%p351_p9)  ;;  %v846_v51 = vld [vmem:[%s1577_s8 + $0x8] sm:$0xff] (!%p351_p9)  ;;  %v848_v61 = vld [vmem:[%s1577_s8 + $0x18] sm:$0xff] (!%p351_p9) }
  0x17   : > { %411 = vperm.xlu0 (!%p351_p9), %1216, %v408_v1   ;;  %v616_v44 = vld [vmem:[%s1576_s7 + $0x20] sm:$0xff] (!%p351_p9)  ;;  %v847_v1 = vld [vmem:[%s1577_s8 + $0x10] sm:$0xff] (!%p351_p9) }
  0x18   : > { %s396_s12 = scalar_select %p395_p10, %s1379_s21, 1  ;;  %v863_v47 = vld [vmem:[%s1578_s9] sm:$0xff] }
  0x19   : > { %v845_v54 = vld [vmem:[%s1577_s8] sm:$0xff]  ;;  %s976_s21 = scalar_lea.sflag [#allocation3], %s392_s16 }
  0x1a   : > { %s1096_s13 = sshll.u32 %s396_s12, 4  ;;  %s1095_s14 = sshll.u32 %s396_s12, 3 }
  0x1b   : > { %s404_s25 = scalar_lea.vmem %s1570_s1, %s1096_s13  ;;  %s399_s5 = scalar_lea.vmem %s1569_s0, %s1095_s14  ;;  %501 = vperm.xlu0 %1216, %v498_v3  }
  0x1c   : > { %v407_v5 = vld [vmem:[%s404_s25 + $0x8] sm:$0x3f]  ;;  %v406_v6 = vld [vmem:[%s404_s25] sm:$0x3f]  ;;  %s394_s25 = scalar_lea.vmem [#allocation2], %s1065_s22  ;;  %s1237_s13 = scalar_lea.vmem %s1236_s26, 512 }
  0x1d   : > { %v497_v7 = vld [vmem:[%s399_s5] sm:$0xff]  ;;  %1070 = vmatprep.subr.msk.mxu0 %vm418_vm0, %v407_v5  ;;  %s990_s29 = sshll.u32 %s394_s25, 4  ;;  %s1529_s29 = int_to_ptr.vmem [resolvable:$true] %s990_s29 }
  0x1e   : > { %v505_v8 = vcombine.high %v497_v7, %v497_v7  ;;  %1071 = vmatpush1.msk.msra.mxu0 %vm418_vm0, %v406_v6  ;;  %s1231_s5 = scalar_lea.vmem %s1529_s29, 256  ;;  %p1238_p0 = scmp.lt.s32.totalorder %s1529_s29, %s1236_s26 }
  0x1f   : > { %1072 = vmatmul.mubr.msk.f32.vlgmr.msra.gmra.mrb[0].mxu0 %vm414_vm1, %v405_v4  ;;  %p1232_p11 = scmp.ne.s32.totalorder %s1529_s29, %s1231_s5  ;;  %p1239_p1 = scmp.lt.s32.totalorder %s1237_s13, %s1231_s5 }
  0x20   : > { %1073 = vmatprep.subr.msk.mxu1 %vm510_vm2, %v505_v8  ;;  %1133 = vmatprep.mubr.msk.f32.mxu0 %vm618_vm4, %v606_v22 }
  0x21   : > { %1074 = vmatpush1.msk.msra.mxu1 %vm510_vm2, %v497_v7  ;;  %p1233_p12 = pnand %p1232_p11, %p1396_p5  ;;  %p1240_p2 = por %p1239_p1, %p1238_p0 }
  0x22   : > { %1075 = vmatmul.mubr.msk.f32.vlgmr.msra.gmra.mrb[0].mxu1 %vm506_vm3, %v496_v9  ;;  %v850_v9 = vld [vmem:[%s1577_s8 + $0x28] sm:$0xff] }
  0x23   : > { %1122 = vmatprep.mubr.msk.f32.mxu1 %vm618_vm4, %v612_v23  ;;  %p1234_p13 = pneg %p1233_p12 }
  0x25   : > { %p1241_p3 = pnand %p1240_p2, %p1234_p13 }
  0x96   : > { %v412_v10 = vpop.permute.xlu0 %411 }
  0x9a   : > { %v502_v13 = vpop.permute.xlu0 %501 }
  0xf2   : > { %v491_v11 = vpop.f32.mrb[0].mxu0 }
  0xf3   : > { %v1426_v12 = vadd.f32 %v491_v11, %v412_v10  ;;  %v493_v14 = vpop.f32.mrb[1].mxu0 }
  0xf4   : > { %v1428_v15 = vadd.f32 %v493_v14, %v412_v10 }
  0xf5   : > { %v581_v16 = vpop.f32.mrb[0].mxu1 }
  0xf6   : > { %v583_v17 = vpop.f32.mrb[1].mxu1  ;;  %v1430_v18 = vadd.f32 %v581_v16, %v502_v13  ;;  %v586_v20 = vadd.f32 %v1428_v15, %v1426_v12  ;;  %v849_v16 = vld [vmem:[%s1577_s8 + $0x20] sm:$0xff] }
  0xf7   : > { %v1432_v19 = vadd.f32 %v583_v17, %v502_v13 }
  0xf8   : > { %587 = vadd.xlane.f32.xlu1 %v586_v20 }
  0xf9   : > { %v591_v21 = vmax.f32 %v1430_v18, %v1432_v19 }
  0xfc   : > { %592 = vmax.xlane.f32.xlu1 %v591_v21 }
 0x185   : > { %v588_v24 = vpop.xlane.xlu1 %587 }
 0x186   : > { %v590_v25 = vmul.f32 0.00390625, %v588_v24 }
 0x188   : > { %v594_v26 = vsub.f32 0.0, %v590_v25 }
 0x189   : > { %v593_v27 = vpop.xlane.xlu1 %592 }
 0x18a   : > { %v595_v28 = vmul.f32 1.442695, %v594_v26  ;;  %v600_v29 = vsub.f32 0.0, %v593_v27  ;;  %v864_v27 = vld [vmem:[%s1578_s9 + $0x8] sm:$0xff] }
 0x18c   : > { %1219 = vpow2.f32 %v595_v28  ;;  %v601_v30 = vmul.f32 1.442695, %v600_v29  ;;  %v866_v28 = vld [vmem:[%s1579_s10 + $0x8] sm:$0xff]  ;;  %v865_v29 = vld [vmem:[%s1579_s10] sm:$0xff] }
 0x18e   : > { %1221 = vpow2.f32 %v601_v30 }
 0x196   : > { %v1220_v31 = vpop.eup %1219 }
 0x197   : > { %v597_v32 = vadd.f32 1.0, %v1220_v31 }
 0x198   : > { %v1222_v33 = vpop.eup %1221 }
 0x199   : > { %1223 = vrcp.f32 %v597_v32  ;;  %v603_v34 = vadd.f32 1.0, %v1222_v33 }
 0x19b   : > { %1225 = vrcp.f32 %v603_v34 }
 0x1a3   : > { %v1224_v35 = vpop.eup %1223 }
 0x1a4   : > { %1131 = vmatprep.subr.mxu0 %v1224_v35 }
 0x1a5   : > { %v1226_v38 = vpop.eup %1225  ;;  %1132 = vmatpush3.msra.mxu0 %v1224_v35 }
 0x1a6   : > { %1120 = vmatprep.subr.mxu1 %v1226_v38  ;;  %1134 = vmatmul.mubr.msk.f32.vlgmr.msra.gmra.mrb[2].mxu0 %vm618_vm4, %v607_v36 }
 0x1a7   : > { %1121 = vmatpush3.msra.mxu1 %v1226_v38  ;;  %1136 = vmatprep.mubr.msk.f32.mxu0 %vm618_vm4, %v608_v37 }
 0x1a8   : > { %1123 = vmatmul.mubr.msk.f32.vlgmr.msra.gmra.mrb[2].mxu1 %vm618_vm4, %v613_v39 }
 0x1a9   : > { %1125 = vmatprep.mubr.msk.f32.mxu1 %vm618_vm4, %v614_v40 }
 0x1aa   : > { %1137 = vmatmul.mubr.msk.f32.gmra.mrb[4].mxu0 %vm618_vm4, %v609_v41 }
 0x1ab   : > { %1139 = vmatprep.mubr.msk.f32.mxu0 %vm618_vm4, %v610_v42 }
 0x1ac   : > { %1126 = vmatmul.mubr.msk.f32.gmra.mrb[4].mxu1 %vm618_vm4, %v615_v43 }
 0x1ad   : > { %1128 = vmatprep.mubr.msk.f32.mxu1 %vm618_vm4, %v616_v44 }
 0x1ae   : > { %1140 = vmatmul.mubr.msk.f32.gmra.mrb[6].mxu0 %vm618_vm4, %v611_v45 }
 0x1b0   : > { %1129 = vmatmul.mubr.msk.f32.gmra.mrb[6].mxu1 %vm618_vm4, %v617_v46 }
 0x1b1   : > { %1154 = vmatprep.mubr.msk.f32.mxu1 %vm867_vm5, %v863_v47 }
 0x279   : > { %v1135_v48 = vpop.f32.mrb[2].mxu0 }
 0x27a   : > { %v816_v49 = vpop.f32.mrb[3].mxu0 }
 0x27b   : > { %v1124_v50 = vpop.f32.mrb[2].mxu1 }
 0x27c   : > { %v822_v52 = vadd.f32 %v1135_v48, %v1124_v50  ;;  %v703_v53 = vpop.f32.mrb[3].mxu1 }
 0x27d   : > { %v817_v55 = vadd.f32 %v816_v49, %v703_v53  ;;  %v1138_v56 = vpop.f32.mrb[4].mxu0 }
 0x27e   : > { %v852_v57 = vadd.f32 %v846_v51, %v822_v52  ;;  %v826_v58 = vpop.f32.mrb[5].mxu0 }
 0x27f   : > { %v851_v59 = vadd.f32 %v845_v54, %v817_v55  ;;  %v1127_v60 = vpop.f32.mrb[4].mxu1 }
 0x280   : > { %v858_v62 = vmax.f32 %v852_v57, 0.0  ;;  %v832_v63 = vadd.f32 %v1138_v56, %v1127_v60  ;;  %v713_v0 = vpop.f32.mrb[5].mxu1 }
 0x281   : > { %v857_v2 = vmax.f32 %v851_v59, 0.0  ;;  %v827_v3 = vadd.f32 %v826_v58, %v713_v0  ;;  %v1141_v4 = vpop.f32.mrb[6].mxu0 }
 0x282   : > { %v854_v5 = vadd.f32 %v848_v61, %v832_v63  ;;  %v836_v6 = vpop.f32.mrb[7].mxu0 }
 0x283   : > { %v853_v7 = vadd.f32 %v847_v1, %v827_v3  ;;  %v1130_v8 = vpop.f32.mrb[6].mxu1  ;;  %v1157_v10 = vpack.c.bf16 %v858_v62, %v857_v2 }
 0x284   : > { %v860_v11 = vmax.f32 %v854_v5, 0.0  ;;  %v842_v13 = vadd.f32 %v1141_v4, %v1130_v8  ;;  %v723_v14 = vpop.f32.mrb[7].mxu1 }
 0x285   : > { %v859_v17 = vmax.f32 %v853_v7, 0.0  ;;  %v837_v20 = vadd.f32 %v836_v6, %v723_v14  ;;  %1158 = vmatprep.subr.bf16.mxu1 %v1157_v10 }
 0x286   : > { %v856_v21 = vadd.f32 %v850_v9, %v842_v13  ;;  %1160 = vmatpush3.bf16.msra.mxu1 %v1157_v10 }
 0x287   : > { %v855_v22 = vadd.f32 %v849_v16, %v837_v20  ;;  %v1161_v23 = vpack.c.bf16 %v860_v11, %v859_v17 }
 0x288   : > { %v862_v24 = vmax.f32 %v856_v21, 0.0 }
 0x289   : > { %v861_v25 = vmax.f32 %v855_v22, 0.0  ;;  %1162 = vmatprep.subr.bf16.mxu1 %v1161_v23 }
 0x28a   : > { %1164 = vmatpush3.bf16.msra.mxu1 %v1161_v23 }
 0x28b   : > { %v1165_v26 = vpack.c.bf16 %v862_v24, %v861_v25 }
 0x28d   : > { %1166 = vmatprep.subr.bf16.mxu1 %v1165_v26 }
 0x28e   : > { %1168 = vmatpush3.bf16.msra.mxu1 %v1165_v26 }
 0x291   : > { %1155 = vmatmul.mubr.msk.f32.vlgmr.msra.gmra.mrb[8].mxu1 %vm867_vm5, %v864_v27 }
 0x364   : > { %v1156_v30 = vpop.f32.mrb[8].mxu1 }
 0x365   : > { %v946_v31 = vadd.f32 %v1156_v30, %v866_v28  ;;  %v940_v32 = vpop.f32.mrb[9].mxu1 }
 0x366   : > { %v941_v33 = vadd.f32 %v940_v32, %v865_v29 }
 0x368   : > { %v949_v34 = vsub.f32 %v946_v31, %v941_v33 }
 0x36a   : > { %v950_v35 = vmul.f32 1.442695, %v949_v34 }
 0x36c   : > { %1227 = vpow2.f32 %v950_v35 }
 0x376   : > { %v1228_v36 = vpop.eup %1227 }
 0x377   : > { %v952_v37 = vadd.f32 1.0, %v1228_v36 }
 0x379   : > { %1229 = vrcp.f32 %v952_v37 }
 0x383   : > { %v1230_v38 = vpop.eup %1229 }
 0x384   : > { %v963_v39 = vsub.f32 2.0, %v1230_v38  ;;  %v955_v40 = vadd.f32 1.0, %v1230_v38 }
 0x386   : > { %966 = vperm.xlu1 %1217, %v963_v39   ;;  %958 = vperm.xlu0 %1216, %v955_v40  }
 0x405   : > { %v967_v41 = vpop.permute.xlu1 %966  ;;  %v959_v42 = vpop.permute.xlu0 %958 }
 0x406   : > { %v969_v43 = vmul.f32 %v967_v41, %v1430_v18  ;;  %v970_v44 = vmul.f32 %v967_v41, %v1432_v19  ;;  %v961_v45 = vmul.f32 %v959_v42, %v1426_v12  ;;  %v962_v46 = vmul.f32 %v959_v42, %v1428_v15 }
 0x408   : > { %v971_v47 = vadd.f32 %v969_v43, %v961_v45  ;;  %v972_v48 = vadd.f32 %v970_v44, %v962_v46 }
 0x40a   : > { %973 = vst [vmem:[%s394_s25] sm:$0xff] %v971_v47  ;;  %974 = vst [vmem:[%s394_s25 + $0x8] sm:$0xff] %v972_v48 }
 0x40b   : > { %1244 = shalt.err (!%p1241_p3)
}
 0x40c   : > { %s1245_s14 = scalar_lea.hbm %s1527_s15, 256  ;;  %s1249_s24 = scalar_lea.hbm %s1580_s11, 512 }
 0x40d   : > { %p1246_p4 = scmp.ne.s32.totalorder %s1527_s15, %s1245_s14  ;;  %p1250_p9 = scmp.lt.u32.totalorder %s1527_s15, %s1580_s11 }
 0x40e   : > { %p1251_p10 = scmp.lt.u32.totalorder %s1249_s24, %s1245_s14  ;;  %p1253_p12 = scmp.lt.u32.totalorder %s1245_s14, %s1527_s15 }
 0x40f   : > { %p1247_p7 = pnand %p1246_p4, %p1396_p5 }
 0x410   : > { %p1252_p11 = por %p1251_p10, %p1250_p9 }
 0x411   : > { %p1248_p8 = pneg %p1247_p7 }
 0x412   : > { %p1254_p13 = por %p1253_p12, %p1252_p11 }
 0x414   : > { %p1255_p0 = pnand %p1254_p13, %p1248_p8 }
 0x416   : > { %1258 = shalt.err (!%p1255_p0)
}
 0x417   : > { %1175 = dma.vmem_to_hbm [thread:$0]  (%p1396_p5), %s1529_s29, 256, %s1527_s15, %s976_s21  }
 0x418 PF: > { %p1181_p1 = scmp.ge.s32.totalorder %s1293_s20, 2  ;;  %s1002_s12 = sand.u32 1, %s1281_s17  }
 0x419   : > { %s1003_s5 = scalar_lea.sflag [#allocation3], %s1002_s12 }
 0x41a   : > { %p1178_p2 = pnand %p1181_p1, %p1400_p6 }
 0x41c   : > { %1276 = dma.done.wait (!%p1178_p2), %s1003_s5, 256  }
 0x41d   : > { %1278 = vsyncadd (!%p1178_p2), %s1003_s5, 4294967040  ;;  %s1588_s19 = sld [smem:[#allocation5_spill]]  ;;  %s1589_s26 = sld [smem:[#allocation6_spill]] }
 0x41e   : > { %p21_p3 = scmp.ge.s32.totalorder %s1383_s23, 4   ;;  %s1590_s17 = smov %s1285_s18 }
 0x41f   : > { %s1593_s20 = smov %s1383_s23 }
 0x420   :  { %23 = sbr.rel (!%p21_p3) target bundleno = 5 (0x5), region = 102 }
 0x423   : > { %s1591_s18 = smov %s1588_s19  ;;  %s1592_s19 = smov %s1589_s26 }
 0x427   :  { %1008 = vsyncpa [#allocation3], 1 }
 0x428   :  { %1010 = vsyncpa [#allocation3 + $0x1], 1 }

</bundles_post_ra>
